<compile_context>
chip_gen: v5e
topology: v5e:2x2
jax: 0.10.0
libtpu: 0.0.40
codegen_flags: <defaults>
</compile_context>

<pallas_src>
import functools

import jax
import jax.numpy as jnp
import numpy as np
from jax import lax
from jax.experimental import pallas as pl
from jax.experimental.pallas import tpu as pltpu

LANES = 128
SPLIT = 3  # head = x[:, :3], tail = x[:, 3:]


# ----------------------------------------------------------------------------
# Small / generic-shape kernel: whole array in VMEM, masked full-width reduces.
# ----------------------------------------------------------------------------
def _l2norm_small_kernel(split, x_ref, o_ref):
    x = x_ref[...].astype(jnp.float32)                       # (B, D)
    B, D = x.shape

    col = lax.broadcasted_iota(jnp.int32, (B, D), 1)
    head_mask = col < split

    xsq = x * x
    head_ssq = jnp.sum(jnp.where(head_mask, xsq, 0.0), axis=1, keepdims=True)
    tail_ssq = jnp.sum(jnp.where(head_mask, 0.0, xsq), axis=1, keepdims=True)

    # Separate masked reduces (no total-minus-head trick) to avoid cancellation
    # when tail energy << head energy (review correctness caveat).
    inv = jnp.where(head_mask, lax.rsqrt(head_ssq), lax.rsqrt(tail_ssq))
    o_ref[...] = (x * inv).astype(o_ref.dtype)


# ----------------------------------------------------------------------------
# Lane-dense large-B kernel: (TR, 128) tiles, segmented reduce via one MXU matmul.
# ----------------------------------------------------------------------------
def _l2norm_packed_kernel(x_ref, m_ref, o_ref):
    x = x_ref[...].astype(jnp.float32)                       # (TR, 128)
    xsq = x * x
    # m_ref is a constant 128x128 block-diagonal 0/1 matrix: m[i, j] = 1 iff lanes
    # i and j belong to the same packed row AND the same group (head or tail).
    # xsq @ m gives each lane the sum of squares of its own group, already
    # broadcast to that group's lanes -> no slice/concat, no XLU reduce.
    ssq = jnp.dot(xsq, m_ref[...], preferred_element_type=jnp.float32)
    o_ref[...] = (x * lax.rsqrt(ssq)).astype(o_ref.dtype)


def _group_matrix(d, split):
    lane = np.arange(LANES)
    seg = lane // d                       # which packed row this lane belongs to
    grp = (lane % d) < split              # head (True) vs tail (False)
    m = (seg[:, None] == seg[None, :]) & (grp[:, None] == grp[None, :])
    return jnp.asarray(m, dtype=jnp.float32)


# ----------------------------------------------------------------------------
# Wrappers
# ----------------------------------------------------------------------------
def _l2norm_forward_small(x, split):
    B, D = x.shape
    vmem = pl.BlockSpec(memory_space=pltpu.MemorySpace.VMEM)
    return pl.pallas_call(
        functools.partial(_l2norm_small_kernel, split),
        out_shape=jax.ShapeDtypeStruct((B, D), x.dtype),
        in_specs=[vmem],
        out_specs=vmem,
    )(x)


def _l2norm_forward_packed(x, split, n_rows):
    B, D = x.shape
    xr = x.reshape(n_rows, LANES)                 # free, row-major contiguous
    m = _group_matrix(D, split)

    # Largest row-tile (multiple of 8) dividing n_rows, capped at 512 so that
    # double-buffered in+out (~4x block bytes) stays far below v7x's 64 MiB VMEM
    # while still amortizing the ~0.35 us per-grid-step overhead.
    tr = n_rows
    for cand in (512, 256, 128, 64, 32, 16, 8):
        if n_rows % cand == 0:
            tr = cand
            break

    out = pl.pallas_call(
        _l2norm_packed_kernel,
        out_shape=jax.ShapeDtypeStruct((n_rows, LANES), x.dtype),
        grid_spec=pltpu.PrefetchScalarGridSpec(
            num_scalar_prefetch=0,
            grid=(n_rows // tr,),
            in_specs=[
                pl.BlockSpec((tr, LANES), lambda i: (i, 0)),
                pl.BlockSpec((LANES, LANES), lambda i: (0, 0)),  # constant, resident
            ],
            out_specs=pl.BlockSpec((tr, LANES), lambda i: (i, 0)),
        ),
        compiler_params=pltpu.CompilerParams(
            dimension_semantics=("parallel",),       # megacore split on v7x
            vmem_limit_bytes=32 * 1024 * 1024,       # explicit budget, safe on v7x/v5e
        ),
    )(xr, m)
    return out.reshape(B, D)


def l2norm_forward(x, split=SPLIT):
    """Forward pass of L2NormActivation."""
    B, D = x.shape
    assert 0 < split < D
    # Lane-dense path when whole rows pack exactly into 128-lane vregs and the
    # packed row count is a multiple of the 8-sublane tile.
    if D <= LANES and LANES % D == 0:
        rows_per_vrow = LANES // D
        if B % rows_per_vrow == 0:
            n_rows = B // rows_per_vrow
            if n_rows % 8 == 0:
                return _l2norm_forward_packed(x, split, n_rows)
    # Small / generic fallback (the shipped 2x8 case lands here).
    return _l2norm_forward_small(x, split)


# ----------------------------------------------------------------------------
# Pure-JAX reference (mirrors the PyTorch forward exactly)
# ----------------------------------------------------------------------------
def reference_forward(x, split=SPLIT):
    head = x[:, :split]
    tail = x[:, split:]
    head_norm = jnp.sqrt(jnp.sum(head * head, axis=1, keepdims=True))
    tail_norm = jnp.sqrt(jnp.sum(tail * tail, axis=1, keepdims=True))
    return jnp.concatenate([head / head_norm, tail / tail_norm], axis=1)


# ----------------------------------------------------------------------------
if __name__ == "__main__":
    # Small shape implied by the module: batch=2, features=8 (head=3, tail=5).
    x_small = jax.random.normal(jax.random.PRNGKey(0), (2, 8), jnp.float32)
    out_small = jax.block_until_ready(l2norm_forward(x_small))
    ref_small = jax.block_until_ready(reference_forward(x_small))
    np.testing.assert_allclose(np.asarray(out_small), np.asarray(ref_small),
                               rtol=1e-5, atol=1e-6)

    # Large-batch path: exercises the lane-dense packed layout + batch grid.
    x_big = jax.random.normal(jax.random.PRNGKey(1), (16384, 8), jnp.float32)
    out_big = jax.block_until_ready(l2norm_forward(x_big))
    ref_big = jax.block_until_ready(reference_forward(x_big))
    np.testing.assert_allclose(np.asarray(out_big), np.asarray(ref_big),
                               rtol=1e-5, atol=1e-5)

    print("KERNEL_OK")
</pallas_src>

<mosaic_0001>
module attributes {stable_mosaic.version = 11 : i64} {
  func.func @_l2norm_small_kernel(%arg0: memref<2x8xf32, #tpu.memory_space<vmem>>, %arg1: memref<2x8xf32, #tpu.memory_space<vmem>>) attributes {dimension_semantics = [], scalar_prefetch = 0 : i64, scratch_operands = 0 : i64, tpu.core_type = #tpu.core_type<tc>} {
    %c0 = arith.constant 0 : index
    %c0_0 = arith.constant 0 : index
    %0 = vector.load %arg0[%c0, %c0_0] : memref<2x8xf32, #tpu.memory_space<vmem>>, vector<2x8xf32>
    %1 = tpu.iota {dimensions = array<i32: 1>} : vector<2x8xi32>
    %c3_i32 = arith.constant 3 : i32
    %2 = vector.broadcast %c3_i32 : i32 to vector<2x8xi32>
    %3 = arith.cmpi slt, %1, %2 : vector<2x8xi32>
    %4 = arith.mulf %0, %0 : vector<2x8xf32>
    %cst = arith.constant 0.000000e+00 : f32
    %5 = vector.broadcast %cst : f32 to vector<2x8xf32>
    %6 = arith.select %3, %4, %5 : vector<2x8xi1>, vector<2x8xf32>
    %cst_1 = arith.constant dense<0.000000e+00> : vector<2xf32>
    %7 = vector.multi_reduction <add>, %6, %cst_1 [1] : vector<2x8xf32> to vector<2xf32>
    %8 = vector.shape_cast %7 : vector<2xf32> to vector<2x1xf32>
    %cst_2 = arith.constant 0.000000e+00 : f32
    %9 = vector.broadcast %cst_2 : f32 to vector<2x8xf32>
    %10 = arith.select %3, %9, %4 : vector<2x8xi1>, vector<2x8xf32>
    %cst_3 = arith.constant dense<0.000000e+00> : vector<2xf32>
    %11 = vector.multi_reduction <add>, %10, %cst_3 [1] : vector<2x8xf32> to vector<2xf32>
    %12 = vector.shape_cast %11 : vector<2xf32> to vector<2x1xf32>
    %13 = math.rsqrt %8 : vector<2x1xf32>
    %14 = math.rsqrt %12 : vector<2x1xf32>
    %15 = vector.shape_cast %13 : vector<2x1xf32> to vector<2x1xf32>
    %16 = vector.broadcast %15 : vector<2x1xf32> to vector<2x8xf32>
    %17 = vector.shape_cast %14 : vector<2x1xf32> to vector<2x1xf32>
    %18 = vector.broadcast %17 : vector<2x1xf32> to vector<2x8xf32>
    %19 = arith.select %3, %16, %18 : vector<2x8xi1>, vector<2x8xf32>
    %20 = arith.mulf %0, %19 : vector<2x8xf32>
    %c0_4 = arith.constant 0 : index
    %c0_5 = arith.constant 0 : index
    %21 = vector.load %arg1[%c0_4, %c0_5] : memref<2x8xf32, #tpu.memory_space<vmem>>, vector<2x8xf32>
    tpu.vector_store %arg1[%c0_4, %c0_5], %20 {strides = array<i32>} : memref<2x8xf32, #tpu.memory_space<vmem>>, vector<2x8xf32>,
    return
  }
}

</mosaic_0001>

<bundles_post_ra>
// kernel: tpu_custom_call.1
= control target key start
LH: loop header
LB: loop body
LE: loop exit
PB: predicated region body
PF: predicated region fallthrough
CT: control target
= control target key end

     0   :  { %6 = vsyncpa [#allocation3], 0  ;;  %s159_s0 = inlined_call_operand.hbm [shape: f32[2,8], index: 0, kind: input, shape index: {}]   ;;  %s160_s1 = inlined_call_operand.hbm [shape: f32[2,8], index: 1, kind: output, shape index: {}]  }
   0x1   :  { %7 = vsyncpa [#allocation4], 0  ;;  %s13_s8 = sshll.u32 %s159_s0, 4  ;;  %s135_s9 = smov [#allocation2]   ;;  %s14_s8 = int_to_ptr.hbm [resolvable:$true] %s13_s8 }
   0x2   :  { %s15_s10 = sshll.u32 %s135_s9, 4  ;;  %s16_s10 = int_to_ptr.vmem [resolvable:$true] %s15_s10 }
   0x3   :  { %18 = dma.hbm_to_vmem [thread:$0]  %s14_s8, 32, %s16_s10, [#allocation3]  }
   0x4   :  { %131 = dma.done.wait [#allocation3], 32  }
   0x5   :  { %132 = vsyncadd [#allocation3], 4294967264  ;;  %v24_v0 = vlaneseq  ;;  %v23_v2 = vld [vmem:[#allocation2] sm:$0x3]  ;;  %vm29_vm1 = vcmask 58368   ;;  %s136_s0 = smov [#allocation5]  }
   0x6   :  { %v27_v3 = vmul.f32 %v23_v2, %v23_v2  ;;  %s65_s11 = sshll.u32 %s136_s0, 4  ;;  %s67_s14 = sshll.u32 %s160_s1, 4  ;;  %s66_s11 = int_to_ptr.vmem [resolvable:$true] %s65_s11  ;;  %s68_s14 = int_to_ptr.hbm [resolvable:$true] %s67_s14 }
   0x7   :  { %v25_v1 = vand.u32 127, %v24_v0 }
   0x9   :  { %vm26_vm0 = vcmp.lt.s32.totalorder %v25_v1, 3 }
   0xa   :  { %v28_v4 = vsel %vm26_vm0, %v27_v3, 0.0  ;;  %v33_v6 = vsel %vm26_vm0, 0.0, %v27_v3 }
   0xb   :  { %v30_v5 = vsel %vm29_vm1, %v28_v4, 0.0  ;;  %v34_v7 = vsel %vm29_vm1, %v33_v6, 0.0 }
   0xc   :  { %31 = vadd.xlane.f32.xlu0 %v30_v5 }
  0x14   :  { %35 = vadd.xlane.f32.xlu0 %v34_v7 }
  0x7f   :  { %v32_v8 = vpop.xlane.xlu0 %31 }
  0x80   :  { %79 = vrsqrt.f32 %v32_v8  ;;  %vm43_vm4 = vweird.f32 %v32_v8 }
  0x86   :  { %v80_v9 = vpop.eup %79 }
  0x87   :  { %v38_v10 = vmul.f32 %v80_v9, %v32_v8  ;;  %v36_v11 = vpop.xlane.xlu0 %35  ;;  %vm44_vm2 = vweird.f32 %v80_v9 }
  0x88   :  { %81 = vrsqrt.f32 %v36_v11  ;;  %vm45_vm5 = vmor %vm43_vm4, %vm44_vm2  ;;  %vm53_vm6 = vweird.f32 %v36_v11 }
  0x89   :  { %v39_v12 = vmul.f32 %v80_v9, %v38_v10 }
  0x8b   :  { %v40_v13 = vmul.f32 0.5, %v39_v12 }
  0x8d   :  { %v41_v16 = vsub.f32 1.5, %v40_v13 }
  0x8e   :  { %v82_v14 = vpop.eup %81 }
  0x8f   :  { %v48_v15 = vmul.f32 %v82_v14, %v36_v11  ;;  %v42_v19 = vmul.f32 %v80_v9, %v41_v16  ;;  %vm54_vm3 = vweird.f32 %v82_v14 }
  0x90   :  { %vm55_vm7 = vmor %vm53_vm6, %vm54_vm3 }
  0x91   :  { %v49_v17 = vmul.f32 %v82_v14, %v48_v15  ;;  %v46_v22 = vsel %vm45_vm5, %v80_v9, %v42_v19 }
  0x93   :  { %v50_v18 = vmul.f32 0.5, %v49_v17 }
  0x95   :  { %v51_v20 = vsub.f32 1.5, %v50_v18 }
  0x97   :  { %v52_v21 = vmul.f32 %v82_v14, %v51_v20 }
  0x99   :  { %v56_v23 = vsel %vm55_vm7, %v82_v14, %v52_v21 }
  0x9a   :  { %v57_v24 = vsel %vm26_vm0, %v46_v22, %v56_v23 }
  0x9b   :  { %v58_v25 = vmul.f32 %v57_v24, %v23_v2 }
  0x9d   :  { %59 = vst.msk [vmem:[#allocation5] sm:$0x3] %vm29_vm1, %v58_v25 }
  0x9e   :  { %70 = dma.vmem_to_hbm [thread:$0]  %s66_s11, 32, %s68_s14, [#allocation4]  }
  0x9f   :  { %133 = dma.done.wait [#allocation4], 32  }
  0xa0   :  { %134 = vsyncadd [#allocation4], 4294967264 }
  0xa1   :  { %75 = vsyncpa [#allocation3], 1 }
  0xa2   :  { %76 = vsyncpa [#allocation4], 1 }

</bundles_post_ra>
